<compile_context>
chip_gen: v7x
topology: tpu7x:2x2x1
jax: 0.10.0
libtpu: 0.0.40
codegen_flags: <defaults>
</compile_context>

<pallas_src>
import jax
import jax.numpy as jnp
from jax.experimental import pallas as pl
from jax.experimental.pallas import tpu as pltpu


# ------------------------- model hyper-parameters ---------------------------
OBSERVATION_SPACE = (4, 4)      # -> input_size = 16
AGENT_SPACE = (4,)              # -> agent_input_size = 4
MEM_SIZE = 12
ROTATIONS = 8
PHEROMONES = 4
POWER = 5

INPUT_SIZE = 1
for d in OBSERVATION_SPACE:
    INPUT_SIZE *= d
AGENT_INPUT_SIZE = 1
for d in AGENT_SPACE:
    AGENT_INPUT_SIZE *= d

D = INPUT_SIZE + AGENT_INPUT_SIZE + MEM_SIZE          # 32: concat feature dim
H1 = 2 ** (2 + POWER)   # 128
H2 = 2 ** (3 + POWER)   # 256
H3 = 2 ** (1 + POWER)   # 64

HEADS_DIM = H1 + ROTATIONS + PHEROMONES   # 140 = [mem-front 128 | rot 8 | phero 4]
TAIL_DIM = 2 * MEM_SIZE                   # 24  = [new_mem 12 | forget 12]
OUT_DIM = ROTATIONS + PHEROMONES + MEM_SIZE  # 24 = [rot 8 | phero 4 | mem 12]
AGENT_FEAT = AGENT_INPUT_SIZE + MEM_SIZE     # 16

# per-row MACs (for the cost estimate)
_MACS_PER_ROW = D * H1 + H1 * H2 + H2 * H3 + H3 * D + D * HEADS_DIM + H1 * TAIL_DIM

_HIGH = jax.lax.Precision.HIGHEST


# ------------------------------- kernel -------------------------------------
def model_kernel(s_ref, a_ref,
                 w1, b1, w2, b2, w3, b3, w4, b4,
                 wh, bh, wt, bt,
                 out_ref):
    s = s_ref[...]                                         # (TB, 16) f32
    a = a_ref[...]                                         # (TB, 16) f32
    x = jnp.concatenate([s, a], axis=1)                    # (TB, 32) f32
    old_mem = a[:, AGENT_INPUT_SIZE:]                      # (TB, 12)

    def lin(h, w_r, b_r):
        # bf16 operands on the MXU, f32 accumulation, f32 bias add.
        return jnp.dot(h.astype(jnp.bfloat16), w_r[...],
                       preferred_element_type=jnp.float32) + b_r[...]

    # general trunk: relu, relu, relu, linear (+ residual combine), all f32 elementwise
    g = jnp.maximum(lin(x, w1, b1), 0.0)
    g = jnp.maximum(lin(g, w2, b2), 0.0)
    g = jnp.maximum(lin(g, w3, b3), 0.0)
    h = lin(g, w4, b4) + x                                 # (TB, 32)

    # all three heads in one fused matmul (activation-free chains pre-folded)
    heads = lin(h, wh, bh)                                 # (TB, 140)
    m = heads[:, :H1]                                      # (TB, 128) memory front

    # fused memory_layer3 | forget_layer on the shared memory activation
    tail = lin(m, wt, bt)                                  # (TB, 24)
    new_mem = jnp.tanh(tail[:, :MEM_SIZE])
    forget = jax.nn.sigmoid(tail[:, MEM_SIZE:])
    mem = new_mem * forget + old_mem * (1.0 - forget)      # (TB, 12)

    # direct stores into the packed output: [rot 8 | phero 4 | mem 12].
    # rot|phero is already the contiguous lane slice 128..139 of `heads`.
    out_ref[:, :ROTATIONS + PHEROMONES] = heads[:, H1:]
    out_ref[:, ROTATIONS + PHEROMONES:] = mem


# ----------------------------- parameter init -------------------------------
def _init_linear(key, fan_in, fan_out):
    """Deterministic PyTorch-style uniform init; weight stored as (in, out)."""
    kw, kb = jax.random.split(key)
    bound = 1.0 / jnp.sqrt(float(fan_in))
    w = jax.random.uniform(kw, (fan_in, fan_out), jnp.float32, -bound, bound)
    b = jax.random.uniform(kb, (1, fan_out), jnp.float32, -bound, bound)
    return w, b


def init_params(seed=0):
    key = jax.random.PRNGKey(seed)
    shapes = [
        ("layer1", D, H1), ("layer2", H1, H2), ("layer3", H2, H3), ("layer4", H3, D),
        ("rotation_layer1", D, H1), ("rotation_layer2", H1, H2), ("rotation_layer3", H2, ROTATIONS),
        ("pheromone_layer1", D, H3), ("pheromone_layer2", H3, PHEROMONES),
        ("memory_layer1", D, H1), ("memory_layer2", H1, H1), ("memory_layer3", H1, MEM_SIZE),
        ("forget_layer", H1, MEM_SIZE),
    ]
    keys = jax.random.split(key, len(shapes))
    params = {}
    for k, (name, fi, fo) in zip(keys, shapes):
        params[name] = _init_linear(k, fi, fo)
    return params


def fold_params(params):
    """One-time algebraic folding / fusion of the activation-free head chains.

    Folding is done in f32 at HIGHEST precision (exact); the resulting weight
    matrices are then cast ONCE to bf16 for the MXU (f32 accumulation in the
    kernel).  Biases stay f32 (added after the f32 accumulation).
    """
    def mm(a, b):
        return jnp.dot(a, b, precision=_HIGH)

    w1, b1 = params["layer1"]
    w2, b2 = params["layer2"]
    w3, b3 = params["layer3"]
    w4, b4 = params["layer4"]
    rw1, rb1 = params["rotation_layer1"]
    rw2, rb2 = params["rotation_layer2"]
    rw3, rb3 = params["rotation_layer3"]
    pw1, pb1 = params["pheromone_layer1"]
    pw2, pb2 = params["pheromone_layer2"]
    mw1, mb1 = params["memory_layer1"]
    mw2, mb2 = params["memory_layer2"]
    mw3, mb3 = params["memory_layer3"]
    fw, fb = params["forget_layer"]

    # rotation head: 3 linears with no activation -> one (32, 8) linear
    w_rot = mm(mm(rw1, rw2), rw3)
    b_rot = mm(mm(rb1, rw2) + rb2, rw3) + rb3
    # pheromone head: 2 linears -> one (32, 4) linear
    w_ph = mm(pw1, pw2)
    b_ph = mm(pb1, pw2) + pb2
    # memory front: 2 linears -> one (32, 128) linear
    w_mf = mm(mw1, mw2)
    b_mf = mm(mb1, mw2) + mb2

    # fuse heads along N: h @ [mem-front | rot | phero]  -> (32, 140)
    w_heads = jnp.concatenate([w_mf, w_rot, w_ph], axis=1)
    b_heads = jnp.concatenate([b_mf, b_rot, b_ph], axis=1)
    # fuse memory tail along N: m @ [memory_layer3 | forget_layer] -> (128, 24)
    w_tail = jnp.concatenate([mw3, fw], axis=1)
    b_tail = jnp.concatenate([mb3, fb], axis=1)

    weights = (w1, w2, w3, w4, w_heads, w_tail)
    biases = (b1, b2, b3, b4, b_heads, b_tail)
    flat = []
    for w, b in zip(weights, biases):
        flat.append(w.astype(jnp.bfloat16))   # bf16 MXU operands
        flat.append(b)                        # f32 bias
    return tuple(flat)


# ------------------------------- wrapper -------------------------------------
def model_forward(state, agent_state, folded, *, tile_b=1024):
    B = state.shape[0]
    # reshape only (no-op views); no wrapper-level concat/pad
    state_flat = state.reshape(B, INPUT_SIZE)
    agent_flat = agent_state.reshape(B, AGENT_FEAT)

    # batch tile: multiple of 8 sublanes, capped at tile_b; ragged last block is
    # masked by Pallas (no padding needed)
    tb = min(tile_b, ((B + 7) // 8) * 8)
    tb = max(8, (tb // 8) * 8)
    grid = (pl.cdiv(B, tb),)

    # weights/biases: full-array blocks, constant index_map -> stay resident in VMEM
    const_specs = [pl.BlockSpec(p.shape, lambda i: (0, 0)) for p in folded]

    weight_bytes = sum(int(p.size) * p.dtype.itemsize for p in folded)
    cost = pl.CostEstimate(
        flops=2 * B * _MACS_PER_ROW,
        transcendentals=2 * MEM_SIZE * B,                     # tanh + sigmoid per row
        bytes_accessed=B * (INPUT_SIZE + AGENT_FEAT + OUT_DIM) * 4 + weight_bytes,
    )

    out = pl.pallas_call(
        model_kernel,
        out_shape=jax.ShapeDtypeStruct((B, OUT_DIM), jnp.float32),
        grid=grid,
        in_specs=[pl.BlockSpec((tb, INPUT_SIZE), lambda i: (i, 0)),
                  pl.BlockSpec((tb, AGENT_FEAT), lambda i: (i, 0))] + const_specs,
        out_specs=pl.BlockSpec((tb, OUT_DIM), lambda i: (i, 0)),
        compiler_params=pltpu.CompilerParams(
            dimension_semantics=("parallel",)),   # on v7x, CORE_PARALLEL is a further option
        cost_estimate=cost,
    )(state_flat, agent_flat, *folded)

    rot = out[:, :ROTATIONS]
    phero = out[:, ROTATIONS:ROTATIONS + PHEROMONES]
    new_mem = out[:, ROTATIONS + PHEROMONES:]
    return rot, phero, new_mem


# ------------------------------ reference -----------------------------------
def model_forward_ref(state, agent_state, params):
    B = state.shape[0]
    state_flat = state.reshape(B, INPUT_SIZE)
    agent_flat = agent_state.reshape(B, AGENT_FEAT)
    x = jnp.concatenate([state_flat, agent_flat], axis=1)
    old_mem = agent_flat[:, AGENT_INPUT_SIZE:]

    def lin(h, name):
        w, b = params[name]
        return jnp.dot(h, w, precision=_HIGH) + b

    g = jax.nn.relu(lin(x, "layer1"))
    g = jax.nn.relu(lin(g, "layer2"))
    g = jax.nn.relu(lin(g, "layer3"))
    g = lin(g, "layer4")
    h = g + x
    rot = lin(lin(lin(h, "rotation_layer1"), "rotation_layer2"), "rotation_layer3")
    phero = lin(lin(h, "pheromone_layer1"), "pheromone_layer2")
    m = lin(lin(h, "memory_layer1"), "memory_layer2")
    new_mem = jnp.tanh(lin(m, "memory_layer3"))
    forget = jax.nn.sigmoid(lin(m, "forget_layer"))
    new_mem = new_mem * forget + old_mem * (1.0 - forget)
    return rot, phero, new_mem


def _check(got, want, tol):
    return bool(jnp.allclose(got, want, atol=tol, rtol=tol))


# --------------------------------- main --------------------------------------
if __name__ == "__main__":
    key = jax.random.PRNGKey(0)
    params = init_params(seed=0)
    folded = fold_params(params)          # one-time weight folding / packing / bf16 cast

    # ---- small primary test (B = 8) ----
    B = 8
    ks, ka = jax.random.split(key)
    state = jax.random.normal(ks, (B,) + OBSERVATION_SPACE, jnp.float32)
    agent_state = jax.random.normal(ka, (B, AGENT_FEAT), jnp.float32)

    fwd = jax.jit(model_forward)
    rot, phero, new_mem = fwd(state, agent_state, folded)
    jax.block_until_ready((rot, phero, new_mem))

    rot_r, phero_r, mem_r = model_forward_ref(state, agent_state, params)
    assert rot.shape == (B, ROTATIONS)
    assert phero.shape == (B, PHEROMONES)
    assert new_mem.shape == (B, MEM_SIZE)
    # bf16 operands / f32 accumulation: tolerance accordingly (observed error ~1e-3)
    TOL = 1e-2
    assert _check(rot, rot_r, TOL)
    assert _check(phero, phero_r, TOL)
    assert _check(new_mem, mem_r, TOL)

    # ---- multi-block + ragged-last-block path (B = 200, tb = 64) ----
    B2 = 200
    ks2, ka2 = jax.random.split(jax.random.PRNGKey(1))
    state2 = jax.random.normal(ks2, (B2,) + OBSERVATION_SPACE, jnp.float32)
    agent2 = jax.random.normal(ka2, (B2, AGENT_FEAT), jnp.float32)
    fwd_small_tile = jax.jit(lambda s, a, f: model_forward(s, a, f, tile_b=64))
    rot2, phero2, mem2 = fwd_small_tile(state2, agent2, folded)
    jax.block_until_ready((rot2, phero2, mem2))
    rot2_r, phero2_r, mem2_r = model_forward_ref(state2, agent2, params)
    assert _check(rot2, rot2_r, TOL)
    assert _check(phero2, phero2_r, TOL)
    assert _check(mem2, mem2_r, TOL)

    print("KERNEL_OK")
</pallas_src>

<mosaic_0001>
module attributes {stable_mosaic.version = 11 : i64} {
  func.func @model_kernel(%arg0: i32, %arg1: memref<8x16xf32, #tpu.memory_space<vmem>>, %arg2: memref<8x16xf32, #tpu.memory_space<vmem>>, %arg3: memref<32x128xbf16, #tpu.memory_space<vmem>>, %arg4: memref<1x128xf32, #tpu.memory_space<vmem>>, %arg5: memref<128x256xbf16, #tpu.memory_space<vmem>>, %arg6: memref<1x256xf32, #tpu.memory_space<vmem>>, %arg7: memref<256x64xbf16, #tpu.memory_space<vmem>>, %arg8: memref<1x64xf32, #tpu.memory_space<vmem>>, %arg9: memref<64x32xbf16, #tpu.memory_space<vmem>>, %arg10: memref<1x32xf32, #tpu.memory_space<vmem>>, %arg11: memref<32x140xbf16, #tpu.memory_space<vmem>>, %arg12: memref<1x140xf32, #tpu.memory_space<vmem>>, %arg13: memref<128x24xbf16, #tpu.memory_space<vmem>>, %arg14: memref<1x24xf32, #tpu.memory_space<vmem>>, %arg15: memref<8x24xf32, #tpu.memory_space<vmem>>) attributes {dimension_semantics = [#tpu.dimension_semantics<parallel>], iteration_bounds = array<i64: 1>, scalar_prefetch = 0 : i64, scratch_operands = 0 : i64, tpu.core_type = #tpu.core_type<tc>, window_params = [{transform_indices = @transform_0, window_bounds = array<i64: 8, 16>}, {transform_indices = @transform_1, window_bounds = array<i64: 8, 16>}, {pipeline_mode = #tpu.pipeline_mode<synchronous>, transform_indices = @transform_2, window_bounds = array<i64: 32, 128>}, {pipeline_mode = #tpu.pipeline_mode<synchronous>, transform_indices = @transform_3, window_bounds = array<i64: 1, 128>}, {pipeline_mode = #tpu.pipeline_mode<synchronous>, transform_indices = @transform_4, window_bounds = array<i64: 128, 256>}, {pipeline_mode = #tpu.pipeline_mode<synchronous>, transform_indices = @transform_5, window_bounds = array<i64: 1, 256>}, {pipeline_mode = #tpu.pipeline_mode<synchronous>, transform_indices = @transform_6, window_bounds = array<i64: 256, 64>}, {pipeline_mode = #tpu.pipeline_mode<synchronous>, transform_indices = @transform_7, window_bounds = array<i64: 1, 64>}, {pipeline_mode = #tpu.pipeline_mode<synchronous>, transform_indices = @transform_8, window_bounds = array<i64: 64, 32>}, {pipeline_mode = #tpu.pipeline_mode<synchronous>, transform_indices = @transform_9, window_bounds = array<i64: 1, 32>}, {pipeline_mode = #tpu.pipeline_mode<synchronous>, transform_indices = @transform_10, window_bounds = array<i64: 32, 140>}, {pipeline_mode = #tpu.pipeline_mode<synchronous>, transform_indices = @transform_11, window_bounds = array<i64: 1, 140>}, {pipeline_mode = #tpu.pipeline_mode<synchronous>, transform_indices = @transform_12, window_bounds = array<i64: 128, 24>}, {pipeline_mode = #tpu.pipeline_mode<synchronous>, transform_indices = @transform_13, window_bounds = array<i64: 1, 24>}, {transform_indices = @transform_14, window_bounds = array<i64: 8, 24>}]} {
    %c0 = arith.constant 0 : index
    %c0_0 = arith.constant 0 : index
    %0 = vector.load %arg1[%c0, %c0_0] : memref<8x16xf32, #tpu.memory_space<vmem>>, vector<8x16xf32>
    %c0_1 = arith.constant 0 : index
    %c0_2 = arith.constant 0 : index
    %1 = vector.load %arg2[%c0_1, %c0_2] : memref<8x16xf32, #tpu.memory_space<vmem>>, vector<8x16xf32>
    %2 = tpu.concatenate %0, %1 in 1 : vector<8x16xf32>, vector<8x16xf32> -> vector<8x32xf32>
    %3 = vector.extract_strided_slice %1 {offsets = [0, 4], sizes = [8, 12], strides = [1, 1]} : vector<8x16xf32> to vector<8x12xf32>
    %4 = arith.truncf %2 : vector<8x32xf32> to vector<8x32xbf16>
    %c0_3 = arith.constant 0 : index
    %c0_4 = arith.constant 0 : index
    %5 = vector.load %arg3[%c0_3, %c0_4] : memref<32x128xbf16, #tpu.memory_space<vmem>>, vector<32x128xbf16>
    %cst = arith.constant dense<0.000000e+00> : vector<8x128xf32>
    %6 = tpu.matmul %4, %5, %cst {dimension_numbers = #tpu.dot_dimension_numbers<[1], [0], [0], [1], [0, 0, 1, 1], [], []>} : vector<8x32xbf16>, vector<32x128xbf16>, vector<8x128xf32> -> vector<8x128xf32>
    %c0_5 = arith.constant 0 : index
    %c0_6 = arith.constant 0 : index
    %7 = vector.load %arg4[%c0_5, %c0_6] : memref<1x128xf32, #tpu.memory_space<vmem>>, vector<1x128xf32>
    %8 = vector.broadcast %7 : vector<1x128xf32> to vector<8x128xf32>
    %9 = arith.addf %6, %8 : vector<8x128xf32>
    %cst_7 = arith.constant 0.000000e+00 : f32
    %10 = vector.broadcast %cst_7 : f32 to vector<8x128xf32>
    %11 = arith.maximumf %9, %10 : vector<8x128xf32>
    %12 = arith.truncf %11 : vector<8x128xf32> to vector<8x128xbf16>
    %c0_8 = arith.constant 0 : index
    %c0_9 = arith.constant 0 : index
    %13 = vector.load %arg5[%c0_8, %c0_9] : memref<128x256xbf16, #tpu.memory_space<vmem>>, vector<128x256xbf16>
    %cst_10 = arith.constant dense<0.000000e+00> : vector<8x256xf32>
    %14 = tpu.matmul %12, %13, %cst_10 {dimension_numbers = #tpu.dot_dimension_numbers<[1], [0], [0], [1], [0, 0, 1, 1], [], []>} : vector<8x128xbf16>, vector<128x256xbf16>, vector<8x256xf32> -> vector<8x256xf32>
    %c0_11 = arith.constant 0 : index
    %c0_12 = arith.constant 0 : index
    %15 = vector.load %arg6[%c0_11, %c0_12] : memref<1x256xf32, #tpu.memory_space<vmem>>, vector<1x256xf32>
    %16 = vector.broadcast %15 : vector<1x256xf32> to vector<8x256xf32>
    %17 = arith.addf %14, %16 : vector<8x256xf32>
    %cst_13 = arith.constant 0.000000e+00 : f32
    %18 = vector.broadcast %cst_13 : f32 to vector<8x256xf32>
    %19 = arith.maximumf %17, %18 : vector<8x256xf32>
    %20 = arith.truncf %19 : vector<8x256xf32> to vector<8x256xbf16>
    %c0_14 = arith.constant 0 : index
    %c0_15 = arith.constant 0 : index
    %21 = vector.load %arg7[%c0_14, %c0_15] : memref<256x64xbf16, #tpu.memory_space<vmem>>, vector<256x64xbf16>
    %cst_16 = arith.constant dense<0.000000e+00> : vector<8x64xf32>
    %22 = tpu.matmul %20, %21, %cst_16 {dimension_numbers = #tpu.dot_dimension_numbers<[1], [0], [0], [1], [0, 0, 1, 1], [], []>} : vector<8x256xbf16>, vector<256x64xbf16>, vector<8x64xf32> -> vector<8x64xf32>
    %c0_17 = arith.constant 0 : index
    %c0_18 = arith.constant 0 : index
    %23 = vector.load %arg8[%c0_17, %c0_18] : memref<1x64xf32, #tpu.memory_space<vmem>>, vector<1x64xf32>
    %24 = vector.broadcast %23 : vector<1x64xf32> to vector<8x64xf32>
    %25 = arith.addf %22, %24 : vector<8x64xf32>
    %cst_19 = arith.constant 0.000000e+00 : f32
    %26 = vector.broadcast %cst_19 : f32 to vector<8x64xf32>
    %27 = arith.maximumf %25, %26 : vector<8x64xf32>
    %28 = arith.truncf %27 : vector<8x64xf32> to vector<8x64xbf16>
    %c0_20 = arith.constant 0 : index
    %c0_21 = arith.constant 0 : index
    %29 = vector.load %arg9[%c0_20, %c0_21] : memref<64x32xbf16, #tpu.memory_space<vmem>>, vector<64x32xbf16>
    %cst_22 = arith.constant dense<0.000000e+00> : vector<8x32xf32>
    %30 = tpu.matmul %28, %29, %cst_22 {dimension_numbers = #tpu.dot_dimension_numbers<[1], [0], [0], [1], [0, 0, 1, 1], [], []>} : vector<8x64xbf16>, vector<64x32xbf16>, vector<8x32xf32> -> vector<8x32xf32>
    %c0_23 = arith.constant 0 : index
    %c0_24 = arith.constant 0 : index
    %31 = vector.load %arg10[%c0_23, %c0_24] : memref<1x32xf32, #tpu.memory_space<vmem>>, vector<1x32xf32>
    %32 = vector.broadcast %31 : vector<1x32xf32> to vector<8x32xf32>
    %33 = arith.addf %30, %32 : vector<8x32xf32>
    %34 = arith.addf %33, %2 : vector<8x32xf32>
    %35 = arith.truncf %34 : vector<8x32xf32> to vector<8x32xbf16>
    %c0_25 = arith.constant 0 : index
    %c0_26 = arith.constant 0 : index
    %36 = vector.load %arg11[%c0_25, %c0_26] : memref<32x140xbf16, #tpu.memory_space<vmem>>, vector<32x140xbf16>
    %cst_27 = arith.constant dense<0.000000e+00> : vector<8x140xf32>
    %37 = tpu.matmul %35, %36, %cst_27 {dimension_numbers = #tpu.dot_dimension_numbers<[1], [0], [0], [1], [0, 0, 1, 1], [], []>} : vector<8x32xbf16>, vector<32x140xbf16>, vector<8x140xf32> -> vector<8x140xf32>
    %c0_28 = arith.constant 0 : index
    %c0_29 = arith.constant 0 : index
    %38 = vector.load %arg12[%c0_28, %c0_29] : memref<1x140xf32, #tpu.memory_space<vmem>>, vector<1x140xf32>
    %39 = vector.broadcast %38 : vector<1x140xf32> to vector<8x140xf32>
    %40 = arith.addf %37, %39 : vector<8x140xf32>
    %41 = vector.extract_strided_slice %40 {offsets = [0, 0], sizes = [8, 128], strides = [1, 1]} : vector<8x140xf32> to vector<8x128xf32>
    %42 = arith.truncf %41 : vector<8x128xf32> to vector<8x128xbf16>
    %c0_30 = arith.constant 0 : index
    %c0_31 = arith.constant 0 : index
    %43 = vector.load %arg13[%c0_30, %c0_31] : memref<128x24xbf16, #tpu.memory_space<vmem>>, vector<128x24xbf16>
    %cst_32 = arith.constant dense<0.000000e+00> : vector<8x24xf32>
    %44 = tpu.matmul %42, %43, %cst_32 {dimension_numbers = #tpu.dot_dimension_numbers<[1], [0], [0], [1], [0, 0, 1, 1], [], []>} : vector<8x128xbf16>, vector<128x24xbf16>, vector<8x24xf32> -> vector<8x24xf32>
    %c0_33 = arith.constant 0 : index
    %c0_34 = arith.constant 0 : index
    %45 = vector.load %arg14[%c0_33, %c0_34] : memref<1x24xf32, #tpu.memory_space<vmem>>, vector<1x24xf32>
    %46 = vector.broadcast %45 : vector<1x24xf32> to vector<8x24xf32>
    %47 = arith.addf %44, %46 : vector<8x24xf32>
    %48 = vector.extract_strided_slice %47 {offsets = [0, 0], sizes = [8, 12], strides = [1, 1]} : vector<8x24xf32> to vector<8x12xf32>
    %49 = math.tanh %48 : vector<8x12xf32>
    %50 = vector.extract_strided_slice %47 {offsets = [0, 12], sizes = [8, 12], strides = [1, 1]} : vector<8x24xf32> to vector<8x12xf32>
    %51 = arith.negf %50 : vector<8x12xf32>
    %52 = math.exp %51 : vector<8x12xf32>
    %cst_35 = arith.constant 1.000000e+00 : f32
    %53 = vector.broadcast %cst_35 : f32 to vector<8x12xf32>
    %54 = arith.addf %53, %52 : vector<8x12xf32>
    %55 = arith.divf %53, %54 : vector<8x12xf32>
    %56 = arith.mulf %49, %55 : vector<8x12xf32>
    %cst_36 = arith.constant 1.000000e+00 : f32
    %57 = vector.broadcast %cst_36 : f32 to vector<8x12xf32>
    %58 = arith.subf %57, %55 : vector<8x12xf32>
    %59 = arith.mulf %3, %58 : vector<8x12xf32>
    %60 = arith.addf %56, %59 : vector<8x12xf32>
    %61 = vector.extract_strided_slice %40 {offsets = [0, 128], sizes = [8, 12], strides = [1, 1]} : vector<8x140xf32> to vector<8x12xf32>
    %c0_37 = arith.constant 0 : index
    %c0_38 = arith.constant 0 : index
    %62 = vector.load %arg15[%c0_37, %c0_38] : memref<8x24xf32, #tpu.memory_space<vmem>>, vector<8x12xf32>
    tpu.vector_store %arg15[%c0_37, %c0_38], %61 {strides = array<i32>} : memref<8x24xf32, #tpu.memory_space<vmem>>, vector<8x12xf32>,
    %c0_39 = arith.constant 0 : index
    %c12 = arith.constant 12 : index
    %63 = vector.load %arg15[%c0_39, %c12] : memref<8x24xf32, #tpu.memory_space<vmem>>, vector<8x12xf32>
    tpu.vector_store %arg15[%c0_39, %c12], %60 {strides = array<i32>} : memref<8x24xf32, #tpu.memory_space<vmem>>, vector<8x12xf32>,
    return
  }
  func.func @transform_0(%arg0: i32) -> (i32, i32) {
    %c0_i32 = arith.constant 0 : i32
    %c0_i32_0 = arith.constant 0 : i32
    return %arg0, %c0_i32 : i32, i32
  }
  func.func @transform_1(%arg0: i32) -> (i32, i32) {
    %c0_i32 = arith.constant 0 : i32
    %c0_i32_0 = arith.constant 0 : i32
    return %arg0, %c0_i32 : i32, i32
  }
  func.func @transform_2(%arg0: i32) -> (i32, i32) {
    %c0_i32 = arith.constant 0 : i32
    %c0_i32_0 = arith.constant 0 : i32
    %c0_i32_1 = arith.constant 0 : i32
    return %c0_i32, %c0_i32_0 : i32, i32
  }
  func.func @transform_3(%arg0: i32) -> (i32, i32) {
    %c0_i32 = arith.constant 0 : i32
    %c0_i32_0 = arith.constant 0 : i32
    %c0_i32_1 = arith.constant 0 : i32
    return %c0_i32, %c0_i32_0 : i32, i32
  }
  func.func @transform_4(%arg0: i32) -> (i32, i32) {
    %c0_i32 = arith.constant 0 : i32
    %c0_i32_0 = arith.constant 0 : i32
    %c0_i32_1 = arith.constant 0 : i32
    return %c0_i32, %c0_i32_0 : i32, i32
  }
  func.func @transform_5(%arg0: i32) -> (i32, i32) {
    %c0_i32 = arith.constant 0 : i32
    %c0_i32_0 = arith.constant 0 : i32
    %c0_i32_1 = arith.constant 0 : i32
    return %c0_i32, %c0_i32_0 : i32, i32
  }
  func.func @transform_6(%arg0: i32) -> (i32, i32) {
    %c0_i32 = arith.constant 0 : i32
    %c0_i32_0 = arith.constant 0 : i32
    %c0_i32_1 = arith.constant 0 : i32
    return %c0_i32, %c0_i32_0 : i32, i32
  }
  func.func @transform_7(%arg0: i32) -> (i32, i32) {
    %c0_i32 = arith.constant 0 : i32
    %c0_i32_0 = arith.constant 0 : i32
    %c0_i32_1 = arith.constant 0 : i32
    return %c0_i32, %c0_i32_0 : i32, i32
  }
  func.func @transform_8(%arg0: i32) -> (i32, i32) {
    %c0_i32 = arith.constant 0 : i32
    %c0_i32_0 = arith.constant 0 : i32
    %c0_i32_1 = arith.constant 0 : i32
    return %c0_i32, %c0_i32_0 : i32, i32
  }
  func.func @transform_9(%arg0: i32) -> (i32, i32) {
    %c0_i32 = arith.constant 0 : i32
    %c0_i32_0 = arith.constant 0 : i32
    %c0_i32_1 = arith.constant 0 : i32
    return %c0_i32, %c0_i32_0 : i32, i32
  }
  func.func @transform_10(%arg0: i32) -> (i32, i32) {
    %c0_i32 = arith.constant 0 : i32
    %c0_i32_0 = arith.constant 0 : i32
    %c0_i32_1 = arith.constant 0 : i32
    return %c0_i32, %c0_i32_0 : i32, i32
  }
  func.func @transform_11(%arg0: i32) -> (i32, i32) {
    %c0_i32 = arith.constant 0 : i32
    %c0_i32_0 = arith.constant 0 : i32
    %c0_i32_1 = arith.constant 0 : i32
    return %c0_i32, %c0_i32_0 : i32, i32
  }
  func.func @transform_12(%arg0: i32) -> (i32, i32) {
    %c0_i32 = arith.constant 0 : i32
    %c0_i32_0 = arith.constant 0 : i32
    %c0_i32_1 = arith.constant 0 : i32
    return %c0_i32, %c0_i32_0 : i32, i32
  }
  func.func @transform_13(%arg0: i32) -> (i32, i32) {
    %c0_i32 = arith.constant 0 : i32
    %c0_i32_0 = arith.constant 0 : i32
    %c0_i32_1 = arith.constant 0 : i32
    return %c0_i32, %c0_i32_0 : i32, i32
  }
  func.func @transform_14(%arg0: i32) -> (i32, i32) {
    %c0_i32 = arith.constant 0 : i32
    %c0_i32_0 = arith.constant 0 : i32
    return %arg0, %c0_i32 : i32, i32
  }
}

</mosaic_0001>

<bundles_post_ra>
// kernel: model_forward.1
= control target key start
LH: loop header
LB: loop body
LE: loop exit
PB: predicated region body
PF: predicated region fallthrough
CT: control target
= control target key end

     0   :  { %v979_v1 = vmov 0.0   ;;  %vm980_vm0 = vmmov 0   ;;  %s981_s15 = smov 16   ;;  %vm54_vm1 = vcmask 130048   ;;  %vm80_vm2 = vcmask 261120   ;;  %s986_s21 = smov 12   ;;  %s1287_s1 = inlined_call_operand.vmem [shape: f32[8,16], index: 1, kind: input, shape index: {}]   ;;  %s1288_s2 = inlined_call_operand.vmem [shape: bf16[32,128], index: 2, kind: input, shape index: {}]   ;;  %s1289_s4 = inlined_call_operand.vmem [shape: bf16[128,256], index: 4, kind: input, shape index: {}]   ;;  %s1290_s0 = inlined_call_operand.vmem [shape: f32[8,16], index: 0, kind: input, shape index: {}]   ;;  %s1291_s6 = inlined_call_operand.vmem [shape: bf16[256,64], index: 6, kind: input, shape index: {}]   ;;  %s1292_s3 = inlined_call_operand.vmem [shape: f32[1,128], index: 3, kind: input, shape index: {}]   ;;  %s1293_s8 = inlined_call_operand.vmem [shape: bf16[64,32], index: 8, kind: input, shape index: {}]   ;;  %s1294_s5 = inlined_call_operand.vmem [shape: f32[1,256], index: 5, kind: input, shape index: {}]   ;;  %s1295_s10 = inlined_call_operand.vmem [shape: bf16[32,140], index: 10, kind: input, shape index: {}]   ;;  %s1296_s7 = inlined_call_operand.vmem [shape: f32[1,64], index: 7, kind: input, shape index: {}]   ;;  %s1297_s12 = inlined_call_operand.vmem [shape: bf16[128,24], index: 12, kind: input, shape index: {}]   ;;  %s1298_s9 = inlined_call_operand.vmem [shape: f32[1,32], index: 9, kind: input, shape index: {}]   ;;  %s1299_s11 = inlined_call_operand.vmem [shape: f32[1,140], index: 11, kind: input, shape index: {}]   ;;  %s1300_s14 = inlined_call_operand.vmem [shape: f32[8,24], index: 14, kind: output, shape index: {}]   ;;  %s1301_s13 = inlined_call_operand.vmem [shape: f32[1,24], index: 13, kind: input, shape index: {}]  }
   0x1   :  { %v1065_v0 = vld [vmem:[%s1287_s1] sm:$0xff]  ;;  %865 = vmatprep.subr.bf16.mxu1 %v979_v1  ;;  %869 = vmatprep.mubr.msk.bf16.mxu1 %vm980_vm0, %v979_v1  ;;  %v914_v3 = vld [vmem:[%s1288_s2 + $0x8] sm:$0xff]   ;;  %v920_v10 = vld [vmem:[%s1289_s4 + $0x14] ss:$8 sps:$4 sm:$0xff]   ;;  %v982_v24 = vmov 0   ;;  %v144_v51 = vlaneseq  ;;  %vm495_vm3 = vcmask 523264  }
   0x2   :  { %51 = vrot.lane.b32.xlu0 %v1065_v0, %s981_s15  ;;  %v913_v2 = vld [vmem:[%s1288_s2] sm:$0xff]   ;;  %v918_v11 = vld [vmem:[%s1289_s4 + $0x10] ss:$8 sps:$4 sm:$0xff]   ;;  %v926_v14 = vld [vmem:[%s1289_s4 + $0x34] ss:$8 sps:$4 sm:$0xff]   ;;  %vm756_vm4 = vcmask 97280  }
   0x3   :  { %866 = vmatpush3.bf16.msra.mxu1 %v913_v2  ;;  %v917_v4 = vld [vmem:[%s1289_s4 + $0x4] ss:$8 sps:$4 sm:$0xff]   ;;  %v915_v8 = vld [vmem:[%s1289_s4] ss:$8 sps:$4 sm:$0xff]   ;;  %v924_v15 = vld [vmem:[%s1289_s4 + $0x30] ss:$8 sps:$4 sm:$0xff]  }
   0x4   :  { %867 = vmatprep.subr.bf16.mxu1 %v979_v1  ;;  %v48_v5 = vld [vmem:[%s1290_s0] sm:$0xff]  ;;  %v932_v18 = vld [vmem:[%s1289_s4 + $0x54] ss:$8 sps:$4 sm:$0xff]   ;;  %v930_v19 = vld [vmem:[%s1289_s4 + $0x50] ss:$8 sps:$4 sm:$0xff]   ;;  %v1198_v52 = vshrl.u32 %v144_v51, 7 }
   0x5   :  { %v923_v12 = vld [vmem:[%s1289_s4 + $0x24] ss:$8 sps:$4 sm:$0xff]   ;;  %v921_v13 = vld [vmem:[%s1289_s4 + $0x20] ss:$8 sps:$4 sm:$0xff]   ;;  %v938_v22 = vld [vmem:[%s1289_s4 + $0x74] ss:$8 sps:$4 sm:$0xff]  }
   0x6   :  { %v929_v16 = vld [vmem:[%s1289_s4 + $0x44] ss:$8 sps:$4 sm:$0xff]   ;;  %v927_v17 = vld [vmem:[%s1289_s4 + $0x40] ss:$8 sps:$4 sm:$0xff]   ;;  %v936_v23 = vld [vmem:[%s1289_s4 + $0x70] ss:$8 sps:$4 sm:$0xff]  }
   0x7   :  { %868 = vmatpush3.bf16.msra.mxu1 %v914_v3  ;;  %v935_v20 = vld [vmem:[%s1289_s4 + $0x64] ss:$8 sps:$4 sm:$0xff]   ;;  %v933_v21 = vld [vmem:[%s1289_s4 + $0x60] ss:$8 sps:$4 sm:$0xff]   ;;  %v943_v29 = vld [vmem:[%s1291_s6 + $0x50] sm:$0xff]   ;;  %v146_v53 = vsub.s32 0, %v1198_v52 }
   0x8   :  { %234 = vmatprep.subr.bf16.mxu1 %v917_v4  ;;  %v939_v25 = vld [vmem:[%s1291_s6 + $0x40] sm:$0xff]   ;;  %v941_v27 = vld [vmem:[%s1291_s6 + $0x48] sm:$0xff]   ;;  %v944_v30 = vld [vmem:[%s1291_s6 + $0x10] sm:$0xff]   ;;  %v150_v55 = vsub.s32 1, %v1198_v52  ;;  %s984_s4 = smov 120   ;;  %vm762_vm5 = vcmask 195680  }
   0x9   :  { %v940_v26 = vld [vmem:[%s1291_s6] sm:$0xff]   ;;  %829 = vmatprep.subr.bf16.mxu0 %v939_v25  ;;  %v942_v28 = vld [vmem:[%s1291_s6 + $0x8] sm:$0xff]   ;;  %v945_v31 = vld [vmem:[%s1291_s6 + $0x58] sm:$0xff]  }
   0xa   :  { %830 = vmatpush3.bf16.msra.mxu0 %v940_v26  ;;  %v946_v32 = vld [vmem:[%s1291_s6 + $0x18] sm:$0xff]   ;;  %v947_v33 = vld [vmem:[%s1291_s6 + $0x60] sm:$0xff]   ;;  %v949_v35 = vld [vmem:[%s1291_s6 + $0x68] sm:$0xff]  }
   0xb   :  { %831 = vmatprep.subr.bf16.mxu0 %v941_v27  ;;  %v948_v34 = vld [vmem:[%s1291_s6 + $0x20] sm:$0xff]   ;;  %v950_v36 = vld [vmem:[%s1291_s6 + $0x28] sm:$0xff]   ;;  %v951_v45 = vld [vmem:[%s1291_s6 + $0x70] sm:$0xff]  }
   0xc   :  { %v768_v37 = vld [vmem:[%s1292_s3] ss:$0 sm:$0xff]  ;;  %v952_v46 = vld [vmem:[%s1291_s6 + $0x30] sm:$0xff]   ;;  %v953_v47 = vld [vmem:[%s1291_s6 + $0x78] sm:$0xff]  }
   0xd   :  { %v954_v48 = vld [vmem:[%s1291_s6 + $0x38] sm:$0xff]   ;;  %v955_v49 = vld [vmem:[%s1293_s8] sm:$0xff]   ;;  %v956_v50 = vld [vmem:[%s1293_s8 + $0x8] sm:$0xff]  }
   0xe   :  { %832 = vmatpush3.bf16.msra.mxu0 %v942_v28  ;;  %v142_v54 = vld [vmem:[%s1294_s5] sm:$0x3]  ;;  %v968_v25 = vld [vmem:[%s1297_s12 + $0x18] sm:$0xff]   ;;  %v970_v27 = vld [vmem:[%s1297_s12 + $0x28] sm:$0xff]  }
   0xf   :  { %833 = vmatprep.subr.bf16.mxu0 %v943_v29  ;;  %v147_v56 = vrot.slane %v142_v54, %v146_v53  ;;  %v151_v57 = vrot.slane %v142_v54, %v150_v55  ;;  %v969_v26 = vld [vmem:[%s1297_s12 + $0x20] sm:$0xff]   ;;  %v971_v28 = vld [vmem:[%s1297_s12 + $0x30] sm:$0xff]  }
  0x10   :  { %v805_v29 = vld [vmem:[%s1298_s9] ss:$0 sm:$0xff] }
  0x12   :  { %834 = vmatpush3.bf16.msra.mxu0 %v944_v30 }
  0x13   :  { %835 = vmatprep.subr.bf16.mxu0 %v945_v31 }
  0x16   :  { %836 = vmatpush3.bf16.msra.mxu0 %v946_v32 }
  0x17   :  { %837 = vmatprep.subr.bf16.mxu0 %v947_v33 }
  0x1a   :  { %838 = vmatpush3.bf16.msra.mxu0 %v948_v34 }
  0x1b   :  { %839 = vmatprep.subr.bf16.mxu0 %v949_v35 }
  0x1e   :  { %840 = vmatpush3.bf16.msra.mxu0 %v950_v36 }
  0x1f   :  { %841 = vmatprep.subr.bf16.mxu0 %v951_v45 }
  0x22   :  { %842 = vmatpush3.bf16.msra.mxu0 %v952_v46  ;;  %v816_v46 = vld [vmem:[%s1301_s13] ss:$0 sm:$0xff]  ;;  %s985_s13 = smov 124  }
  0x23   :  { %843 = vmatprep.subr.bf16.mxu0 %v953_v47 }
  0x26   :  { %844 = vmatpush3.bf16.msra.mxu0 %v954_v48 }
  0x27   :  { %885 = vmatprep.subr.bf16.mxu0 %v979_v1 }
  0x74   :  { %v52_v6 = vpop.permute.xlu0 %51 }
  0x75   :  { %v1084_v7 = vsel %vm54_vm1, %v48_v5, %v52_v6  ;;  %v957_v6 = vld [vmem:[%s1293_s8 + $0x10] sm:$0xff]  }
  0x76   :  { %v56_v9 = vpack.c.bf16 %v1084_v7, %v1084_v7 }
  0x78   :  { %870 = vmatmul.mubr.msk.bf16.vlgmr.msra.gmra.mrb[0].mxu1 %vm80_vm2, %v56_v9  ;;  %v961_v9 = vld [vmem:[%s1295_s10 + $0x4] ss:$8 sps:$4 sm:$0xff]  }
  0x79   :  { %235 = vmatpush1.bf16.msra.mxu1 %v915_v8  ;;  %266 = vmatprep.mubr.bf16.mxu1 %v982_v24  ;;  %v958_v8 = vld [vmem:[%s1293_s8 + $0x18] sm:$0xff]   ;;  %s983_s8 = smov 116  }
  0x7a   :  { %236 = vmatprep.subr.bf16.mxu1 %v920_v10 }
  0x7d   :  { %237 = vmatpush1.bf16.msra.mxu1 %v918_v11  ;;  %v788_v11 = vld [vmem:[%s1296_s7] ss:$0 sm:$0xff] }
  0x7e   :  { %238 = vmatprep.subr.bf16.mxu1 %v923_v12 }
  0x81   :  { %239 = vmatpush1.bf16.msra.mxu1 %v921_v13 }
  0x82   :  { %240 = vmatprep.subr.bf16.mxu1 %v926_v14 }
  0x85   :  { %241 = vmatpush1.bf16.msra.mxu1 %v924_v15 }
  0x86   :  { %242 = vmatprep.subr.bf16.mxu1 %v929_v16 }
  0x89   :  { %243 = vmatpush1.bf16.msra.mxu1 %v927_v17 }
  0x8a   :  { %244 = vmatprep.subr.bf16.mxu1 %v932_v18  ;;  %v959_v18 = vld [vmem:[%s1295_s10] ss:$8 sps:$4 sm:$0xff]  }
  0x8d   :  { %245 = vmatpush1.bf16.msra.mxu1 %v930_v19 }
  0x8e   :  { %246 = vmatprep.subr.bf16.mxu1 %v935_v20  ;;  %v964_v20 = vld [vmem:[%s1295_s10 + $0x14] ss:$8 sps:$4 sm:$0xff]  }
  0x91   :  { %247 = vmatpush1.bf16.msra.mxu1 %v933_v21  ;;  %v962_v21 = vld [vmem:[%s1295_s10 + $0x10] ss:$8 sps:$4 sm:$0xff]  }
  0x92   :  { %248 = vmatprep.subr.bf16.mxu1 %v938_v22  ;;  %v965_v22 = vld [vmem:[%s1297_s12] sm:$0xff]  }
  0x95   :  { %249 = vmatpush1.bf16.msra.mxu1 %v936_v23  ;;  %v966_v23 = vld [vmem:[%s1297_s12 + $0x8] sm:$0xff]  }
  0x96   :  { %873 = vmatprep.subr.bf16.mxu1 %v979_v1 }
 0x14b   :  { %v118_v38 = vpop.f32.mrb[0].mxu1 }
 0x14c   :  { %v119_v39 = vadd.f32 %v768_v37, %v118_v38  ;;  %v871_v40 = vpop.f32.mrb[1].mxu1  ;;  %v972_v37 = vld [vmem:[%s1297_s12 + $0x38] sm:$0xff]  }
 0x14d   :  { %v121_v41 = vpop.f32.mrb[2].mxu1 }
 0x14e   :  { %v124_v42 = vmax.f32 %v119_v39, 0.0  ;;  %v872_v43 = vpop.f32.mrb[3].mxu1 }
 0x150   :  { %v125_v44 = vpack.c.bf16 %v124_v42, %v124_v42 }
 0x152   :  { %267 = vmatmul.mubr.bf16.vlgmr.msra.gmra.mrb[4].mxu1 %v125_v44 }
 0x153   :  { %881 = vmatprep.mubr.msk.bf16.mxu1 %vm980_vm0, %v979_v1  ;;  %874 = vmatpush3.bf16.msra.mxu1 %v955_v49 }
 0x154   :  { %875 = vmatprep.subr.bf16.mxu1 %v979_v1 }
 0x157   :  { %876 = vmatpush3.bf16.msra.mxu1 %v956_v50 }
 0x158   :  { %877 = vmatprep.subr.bf16.mxu1 %v979_v1 }
 0x15b   :  { %878 = vmatpush3.bf16.msra.mxu1 %v957_v6 }
 0x15c   :  { %879 = vmatprep.subr.bf16.mxu1 %v979_v1 }
 0x15f   :  { %880 = vmatpush3.bf16.msra.mxu1 %v958_v8 }
 0x160   :  { %580 = vmatprep.subr.bf16.mxu1 %v961_v9 }
 0x225   :  { %v268_v58 = vpop.f32.mrb[4].mxu1 }
 0x226   :  { %v269_v59 = vadd.f32 %v268_v58, %v147_v56  ;;  %v270_v60 = vpop.f32.mrb[5].mxu1 }
 0x227   :  { %v271_v61 = vadd.f32 %v270_v60, %v151_v57  ;;  %v272_v62 = vpop.f32.mrb[6].mxu1 }
 0x228   :  { %v275_v63 = vmax.f32 %v269_v59, 0.0  ;;  %v273_v2 = vpop.f32.mrb[7].mxu1 }
 0x229   :  { %v276_v3 = vmax.f32 %v271_v61, 0.0 }
 0x22a   :  { %v277_v5 = vpack.c.bf16 %v275_v63, %v275_v63 }
 0x22b   :  { %v278_v4 = vpack.c.bf16 %v276_v3, %v276_v3 }
 0x22d   :  { %446 = vmatprep.mubr.bf16.mxu0 %v278_v4 }
 0x22e   :  { %447 = vmatmul.mubr.bf16.vlgmr.msra.gmra.mrb[0].mxu0 %v277_v5 }
 0x22f   :  { %901 = vmatprep.mubr.msk.bf16.mxu0 %vm980_vm0, %v979_v1  ;;  %886 = vmatpush3.bf16.msra.mxu0 %v965_v22 }
 0x230   :  { %887 = vmatprep.subr.bf16.mxu0 %v979_v1 }
 0x233   :  { %888 = vmatpush3.bf16.msra.mxu0 %v966_v23 }
 0x234   :  { %889 = vmatprep.subr.bf16.mxu0 %v979_v1 }
 0x301   :  { %v845_v10 = vpop.f32.mrb[0].mxu0 }
 0x302   :  { %v846_v12 = vpop.f32.mrb[1].mxu0 }
 0x303   :  { %v847_v13 = vadd.f32 %v846_v12, %v845_v10  ;;  %v848_v14 = vpop.f32.mrb[2].mxu0 }
 0x304   :  { %v849_v15 = vpop.f32.mrb[3].mxu0 }
 0x305   :  { %v449_v16 = vadd.f32 %v847_v13, %v788_v11 }
 0x307   :  { %v454_v17 = vmax.f32 %v449_v16, 0.0 }
 0x309   :  { %v455_v19 = vpack.c.bf16 %v454_v17, %v454_v17 }
 0x30b   :  { %882 = vmatmul.mubr.msk.bf16.vlgmr.msra.gmra.mrb[8].mxu1 %vm495_vm3, %v455_v19 }
 0x30c   :  { %581 = vmatpush1.bf16.msra.mxu1 %v959_v18  ;;  %612 = vmatprep.mubr.bf16.mxu1 %v982_v24  ;;  %v967_v24 = vld [vmem:[%s1297_s12 + $0x10] sm:$0xff]  }
 0x30d   :  { %582 = vmatprep.subr.bf16.mxu1 %v964_v20  ;;  %890 = vmatpush3.bf16.msra.mxu0 %v967_v24 }
 0x30e   :  { %891 = vmatprep.subr.bf16.mxu0 %v979_v1 }
 0x310   :  { %583 = vmatpush1.bf16.msra.mxu1 %v962_v21 }
 0x311   :  { %892 = vmatpush3.bf16.msra.mxu0 %v968_v25 }
 0x312   :  { %893 = vmatprep.subr.bf16.mxu0 %v979_v1 }
 0x315   :  { %894 = vmatpush3.bf16.msra.mxu0 %v969_v26 }
 0x316   :  { %895 = vmatprep.subr.bf16.mxu0 %v979_v1 }
 0x319   :  { %896 = vmatpush3.bf16.msra.mxu0 %v970_v27 }
 0x31a   :  { %897 = vmatprep.subr.bf16.mxu0 %v979_v1 }
 0x31d   :  { %898 = vmatpush3.bf16.msra.mxu0 %v971_v28 }
 0x31e   :  { %899 = vmatprep.subr.bf16.mxu0 %v979_v1  ;;  %v545_v1 = vld [vmem:[%s1299_s11] sm:$0x3] }
 0x31f   :  { %v550_v38 = vrot.slane %v545_v1, %v146_v53  ;;  %v554_v39 = vrot.slane %v545_v1, %v150_v55 }
 0x321   :  { %900 = vmatpush3.bf16.msra.mxu0 %v972_v37 }
 0x3de   :  { %v533_v30 = vpop.f32.mrb[8].mxu1 }
 0x3df   :  { %v534_v31 = vadd.f32 %v805_v29, %v533_v30  ;;  %v883_v32 = vpop.f32.mrb[9].mxu1 }
 0x3e0   :  { %v536_v33 = vpop.f32.mrb[10].mxu1 }
 0x3e1   :  { %v539_v34 = vadd.f32 %v534_v31, %v1084_v7  ;;  %v884_v35 = vpop.f32.mrb[11].mxu1 }
 0x3e3   :  { %v540_v36 = vpack.c.bf16 %v539_v34, %v539_v34 }
 0x3e5   :  { %815 = vmatmul.mubr.msk.bf16.vlgmr.msra.gmra.mrb[12].mxu1 %vm80_vm2, %v540_v36 }
 0x4b8   :  { %v614_v7 = vpop.f32.mrb[12].mxu1 }
 0x4b9   :  { %v615_v40 = vadd.f32 %v614_v7, %v550_v38  ;;  %v616_v41 = vpop.f32.mrb[13].mxu1 }
 0x4ba   :  { %v617_v42 = vadd.f32 %v616_v41, %v554_v39  ;;  %v618_v43 = vpop.f32.mrb[14].mxu1 }
 0x4bb   :  { %v621_v44 = vpack.c.bf16 %v615_v40, %v615_v40  ;;  %v619_v45 = vpop.f32.mrb[15].mxu1 }
 0x4bc   :  { %757 = vst.msk [vmem:[%s1300_s14] sm:$0xff] %vm756_vm4, %v617_v42 }
 0x4bd   :  { %902 = vmatmul.mubr.bf16.vlgmr.msra.gmra.mrb[4].mxu0 %v621_v44 }
 0x590   :  { %v727_v47 = vpop.f32.mrb[4].mxu0 }
 0x591   :  { %v728_v48 = vadd.f32 %v816_v46, %v727_v47  ;;  %v903_v49 = vpop.f32.mrb[5].mxu0 }
 0x592   :  { %v730_v50 = vpop.f32.mrb[6].mxu0 }
 0x593   :  { %v825_v51 = vmul.f32 -1.442695, %v728_v48  ;;  %v904_v52 = vpop.f32.mrb[7].mxu0 }
 0x595   :  { %973 = vpow2.f32 %v825_v51 }
 0x59f   :  { %v974_v53 = vpop.eup %973 }
 0x5a0   :  { %v737_v54 = vadd.f32 1.0, %v974_v53 }
 0x5a2   :  { %975 = vrcp.f32 %v737_v54 }
 0x5a3   :  { %977 = vtanh.f32 %v728_v48 }
 0x5ac   :  { %v976_v55 = vpop.eup %975 }
 0x5ad   :  { %741 = vrot.lane.b32.xlu1 %v976_v55, %s983_s8  ;;  %v745_v56 = vsub.f32 1.0, %v976_v55  ;;  %v978_v60 = vpop.eup %977 }
 0x5af   :  { %747 = vrot.lane.b32.xlu0 %v745_v56, %s984_s4 }
 0x61f   :  { %v742_v59 = vpop.permute.xlu1 %741 }
 0x620   :  { %v744_v61 = vmul.f32 %v978_v60, %v742_v59 }
 0x621   :  { %v748_v57 = vpop.permute.xlu0 %747 }
 0x622   :  { %v750_v58 = vmul.f32 %v748_v57, %v1065_v0 }
 0x624   :  { %752 = vrot.lane.b32.xlu1 %v750_v58, %s985_s13 }
 0x696   :  { %v753_v62 = vpop.permute.xlu1 %752 }
 0x697   :  { %v755_v63 = vadd.f32 %v753_v62, %v744_v61 }
 0x699   :  { %759 = vrot.lane.b32.xlu0 %v755_v63, %s986_s21 }
 0x70b   :  { %v760_v2 = vpop.permute.xlu0 %759 }
 0x70c   :  { %763 = vst.msk [vmem:[%s1300_s14] sm:$0xff] %vm762_vm5, %v760_v2 }

</bundles_post_ra>
